<compile_context>
chip_gen: v6e
topology: v6e:2x2x1
jax: 0.10.0
libtpu: 0.0.40
codegen_flags: <defaults>
</compile_context>

<pallas_src>
import math
from functools import partial

import jax
import jax.numpy as jnp
from jax.experimental import pallas as pl
from jax.experimental.pallas import tpu as pltpu


def _lane_pad(n):
    """Round up to a multiple of 128 lanes (VMEM footprint of one row)."""
    return ((n + 127) // 128) * 128


def _patch_matmul_kernel(p_ref, w_ref, o_ref):
    # p_ref: (TILE_M, Kp) packed patch rows, w_ref: (Kp, Np) block-diagonal
    # flattened conv weight (VMEM-resident across the whole grid),
    # o_ref: (TILE_M, Np).  Plain MXU matmul with f32 accumulation.
    o_ref[...] = jnp.dot(
        p_ref[...], w_ref[...], preferred_element_type=jnp.float32
    ).astype(o_ref.dtype)


def _pick_tile_rows(m_rows, kp, np_, in_itemsize, out_itemsize, w_itemsize,
                    vmem_budget_bytes=24 * 1024 * 1024):
    """Largest row tile (multiple of 256) whose double-buffered in/out tiles
    plus the resident weight fit a conservative VMEM budget.  The footprint
    math includes 128-lane padding so it stays correct if Kp/Np shrink."""
    weight_bytes = 2 * kp * _lane_pad(np_) * w_itemsize
    per_row = 2 * (_lane_pad(kp) * in_itemsize + _lane_pad(np_) * out_itemsize)
    tile = (vmem_budget_bytes - weight_bytes) // max(per_row, 1)
    tile = max(256, min(int(tile), 4096))
    tile = (tile // 256) * 256
    if tile < m_rows:
        return tile
    # One tile would cover all rows.  If there is enough work, still split it
    # so grid_m >= 2 and the "parallel" axis can be sharded across both
    # TensorCores on v7x (harmless on single-TC v5e/v6e).
    if m_rows >= 512:
        half = (((m_rows + 1) // 2) + 255) // 256 * 256
        if half < m_rows:
            return half
    return m_rows                    # full dim -> always a legal block shape


def _patch_matmul(patches, w_big, *, out_dtype=jnp.float32):
    Mp, Kp = patches.shape
    Kw, Np = w_big.shape
    assert Kp == Kw
    in_b = patches.dtype.itemsize
    out_b = jnp.dtype(out_dtype).itemsize

    tile_m = _pick_tile_rows(Mp, Kp, Np, in_b, out_b, w_big.dtype.itemsize)
    grid_m = pl.cdiv(Mp, tile_m)

    cost = pl.CostEstimate(
        flops=2 * Mp * Kp * Np,
        transcendentals=0,
        bytes_accessed=(Mp * Kp * in_b
                        + Kp * Np * w_big.dtype.itemsize
                        + Mp * Np * out_b),
    )

    return pl.pallas_call(
        _patch_matmul_kernel,
        out_shape=jax.ShapeDtypeStruct((Mp, Np), out_dtype),
        grid_spec=pltpu.PrefetchScalarGridSpec(
            num_scalar_prefetch=0,
            grid=(grid_m,),
            in_specs=[
                # M-tiled packed patch rows: pipelined/double-buffered.
                pl.BlockSpec((tile_m, Kp), lambda i: (i, 0)),
                # Constant block index -> weight fetched once, VMEM-resident.
                pl.BlockSpec((Kp, Np), lambda i: (0, 0)),
            ],
            out_specs=pl.BlockSpec((tile_m, Np), lambda i: (i, 0)),
        ),
        compiler_params=pltpu.CompilerParams(
            # Rows are independent -> shard the grid across TCs on v7x.
            dimension_semantics=("parallel",),
            # Above the default scoped limit everywhere, below v7x's 64 MiB.
            vmem_limit_bytes=48 * 1024 * 1024,
        ),
        cost_estimate=cost,
    )(patches, w_big)


@partial(jax.jit, static_argnames=("patch_size", "compute_dtype", "out_dtype"))
def _patch_embed_forward(x, weight, *, patch_size, compute_dtype, out_dtype):
    B, C, T, H, W = x.shape
    ph = pw = patch_size
    Hp, Wp = H // ph, W // pw
    E = weight.shape[0]
    K = C * ph * pw
    M = B * T * Hp * Wp

    # Pack `pack` consecutive patch rows into one lane-dense row.  pack=4
    # gives a 256-lane bf16 input row and a 128-lane output row (4*E = 128).
    pack = 4 if M % 4 == 0 else (2 if M % 2 == 0 else 1)

    # Rearrange 'b c t h w -> (b t hp wp) (c ph pw)' + bf16 cast.  Under this
    # jit XLA fuses the transpose and the cast into a single HBM pass; the
    # pack reshape below is pure metadata (same row-major memory as (M, K)).
    p = x.reshape(B, C, T, Hp, ph, Wp, pw)
    p = jnp.transpose(p, (0, 2, 3, 5, 1, 4, 6)).astype(compute_dtype)
    p = p.reshape(M // pack, pack * K)

    # Flatten conv weight (E, C, ph, pw) -> (K, E) and replicate it
    # block-diagonally so out_packed = p_packed @ w_big computes exactly
    # `pack` rows of patches @ w_flat per packed row.
    w_flat = weight.reshape(E, K).T
    w_big = jnp.kron(jnp.eye(pack, dtype=w_flat.dtype), w_flat)
    w_big = w_big.astype(compute_dtype)

    out = _patch_matmul(p, w_big, out_dtype=out_dtype)   # (M//pack, pack*E)
    # Same row-major memory as (M, E): metadata-only reshape.
    return out.reshape(B * T, Hp * Wp, E)


class PatchEmbed:
    """Image to Patch Embedding (Pallas TPU version, surgery=False => no bias)."""

    def __init__(self, img_size=16, patch_size=4, in_chans=4, embed_dim=32,
                 num_frames=2, key=None, compute_dtype=jnp.bfloat16):
        self.img_size = (img_size, img_size)
        self.patch_size = (patch_size, patch_size)
        self.num_patches = (img_size // patch_size) ** 2 * num_frames
        self.in_chans = in_chans
        self.embed_dim = embed_dim
        self.compute_dtype = compute_dtype
        if key is None:
            key = jax.random.PRNGKey(0)
        fan_in = in_chans * patch_size * patch_size
        bound = 1.0 / math.sqrt(fan_in)
        # torch conv weight layout: (embed_dim, in_chans, p, p)
        self.weight = jax.random.uniform(
            key, (embed_dim, in_chans, patch_size, patch_size),
            minval=-bound, maxval=bound, dtype=jnp.float32)

    def __call__(self, x):
        # x: (B, C, T, H, W) float32
        T = x.shape[2]
        W_out = x.shape[4] // self.patch_size[1]
        out = _patch_embed_forward(
            x, self.weight,
            patch_size=self.patch_size[0],
            compute_dtype=self.compute_dtype,
            # TODO(synk): emit bf16 here if the downstream consumer tolerates
            # it -- cuts the kernel's HBM output traffic roughly in half.
            out_dtype=jnp.float32,
        )
        return out, T, W_out


def _reference_conv_f32(x, weight, patch_size):
    # Pure-JAX f32 conv reference (matches the torch module math).
    B, C, T, H, W = x.shape
    x2 = jnp.transpose(x, (0, 2, 1, 3, 4)).reshape(B * T, C, H, W)
    y = jax.lax.conv_general_dilated(
        x2, weight,
        window_strides=(patch_size, patch_size),
        padding="VALID",
        dimension_numbers=("NCHW", "OIHW", "NCHW"))
    E = weight.shape[0]
    Hp, Wp = y.shape[-2], y.shape[-1]
    y = y.reshape(B * T, E, Hp * Wp)
    return jnp.transpose(y, (0, 2, 1))


def _reference_matmul_bf16(x, weight, patch_size):
    # Same bf16-input / f32-accumulate math as the kernel, in plain JAX.
    B, C, T, H, W = x.shape
    E = weight.shape[0]
    Hp, Wp = H // patch_size, W // patch_size
    K = C * patch_size * patch_size
    p = x.reshape(B, C, T, Hp, patch_size, Wp, patch_size)
    p = jnp.transpose(p, (0, 2, 3, 5, 1, 4, 6)).reshape(B * T * Hp * Wp, K)
    w = weight.reshape(E, K).T
    y = jnp.dot(p.astype(jnp.bfloat16), w.astype(jnp.bfloat16),
                preferred_element_type=jnp.float32)
    return y.reshape(B * T, Hp * Wp, E)


if __name__ == "__main__":
    key = jax.random.PRNGKey(0)
    k_w, k_x = jax.random.split(key)

    B, C, T, H, W = 2, 4, 2, 16, 16
    patch_size, embed_dim = 4, 32

    module = PatchEmbed(img_size=H, patch_size=patch_size, in_chans=C,
                        embed_dim=embed_dim, num_frames=T, key=k_w)

    x = jax.random.normal(k_x, (B, C, T, H, W), dtype=jnp.float32)

    out, t_out, w_out = module(x)
    out = jax.block_until_ready(out)

    Hp, Wp = H // patch_size, W // patch_size
    assert out.shape == (B * T, Hp * Wp, embed_dim)
    assert t_out == T and w_out == Wp

    # Exact-math check against a plain-JAX bf16 matmul (same compute path;
    # the block-diagonal packing only adds exact zeros to the f32 accumulator).
    ref_bf16 = _reference_matmul_bf16(x, module.weight, patch_size)
    assert jnp.allclose(out, ref_bf16, atol=1e-4, rtol=1e-4)

    # Sanity check against the full-f32 conv reference (bf16 input rounding
    # accounts for the tolerance).
    ref_f32 = _reference_conv_f32(x, module.weight, patch_size)
    assert jnp.allclose(out, ref_f32, atol=5e-2, rtol=5e-2)

    print("KERNEL_OK")
</pallas_src>

<mosaic_0001>
module attributes {stable_mosaic.version = 11 : i64} {
  func.func @_patch_matmul_kernel(%arg0: i32, %arg1: memref<16x256xbf16, #tpu.memory_space<vmem>>, %arg2: memref<256x128xbf16, #tpu.memory_space<vmem>>, %arg3: memref<16x128xf32, #tpu.memory_space<vmem>>) attributes {dimension_semantics = [#tpu.dimension_semantics<parallel>], iteration_bounds = array<i64: 1>, scalar_prefetch = 0 : i64, scratch_operands = 0 : i64, tpu.core_type = #tpu.core_type<tc>, window_params = [{transform_indices = @transform_0, window_bounds = array<i64: 16, 256>}, {pipeline_mode = #tpu.pipeline_mode<synchronous>, transform_indices = @transform_1, window_bounds = array<i64: 256, 128>}, {transform_indices = @transform_2, window_bounds = array<i64: 16, 128>}]} {
    %c0 = arith.constant 0 : index
    %c0_0 = arith.constant 0 : index
    %0 = vector.load %arg1[%c0, %c0_0] : memref<16x256xbf16, #tpu.memory_space<vmem>>, vector<16x256xbf16>
    %c0_1 = arith.constant 0 : index
    %c0_2 = arith.constant 0 : index
    %1 = vector.load %arg2[%c0_1, %c0_2] : memref<256x128xbf16, #tpu.memory_space<vmem>>, vector<256x128xbf16>
    %cst = arith.constant dense<0.000000e+00> : vector<16x128xf32>
    %2 = tpu.matmul %0, %1, %cst {dimension_numbers = #tpu.dot_dimension_numbers<[1], [0], [0], [1], [0, 0, 1, 1], [], []>} : vector<16x256xbf16>, vector<256x128xbf16>, vector<16x128xf32> -> vector<16x128xf32>
    %c0_3 = arith.constant 0 : index
    %c0_4 = arith.constant 0 : index
    %3 = vector.load %arg3[%c0_3, %c0_4] : memref<16x128xf32, #tpu.memory_space<vmem>>, vector<16x128xf32>
    tpu.vector_store %arg3[%c0_3, %c0_4], %2 {strides = array<i32>} : memref<16x128xf32, #tpu.memory_space<vmem>>, vector<16x128xf32>,
    return
  }
  func.func @transform_0(%arg0: i32) -> (i32, i32) {
    %c0_i32 = arith.constant 0 : i32
    %c0_i32_0 = arith.constant 0 : i32
    return %arg0, %c0_i32 : i32, i32
  }
  func.func @transform_1(%arg0: i32) -> (i32, i32) {
    %c0_i32 = arith.constant 0 : i32
    %c0_i32_0 = arith.constant 0 : i32
    %c0_i32_1 = arith.constant 0 : i32
    return %c0_i32, %c0_i32_0 : i32, i32
  }
  func.func @transform_2(%arg0: i32) -> (i32, i32) {
    %c0_i32 = arith.constant 0 : i32
    %c0_i32_0 = arith.constant 0 : i32
    return %arg0, %c0_i32 : i32, i32
  }
}

</mosaic_0001>

<bundles_post_ra>
// kernel: _patch_embed_forward.1
= control target key start
LH: loop header
LB: loop body
LE: loop exit
PB: predicated region body
PF: predicated region fallthrough
CT: control target
= control target key end

     0   :  { %s333_s1 = inlined_call_operand.vmem [shape: bf16[256,128], index: 1, kind: input, shape index: {}]   ;;  %s334_s0 = inlined_call_operand.vmem [shape: bf16[16,256], index: 0, kind: input, shape index: {}]   ;;  %s335_s2 = inlined_call_operand.vmem [shape: f32[16,128], index: 2, kind: output, shape index: {}]  }
   0x1   :  { %v239_v0 = vld [vmem:[%s333_s1 + $0x78] sm:$0xff]   ;;  %v241_v2 = vld [vmem:[%s333_s1 + $0x70] sm:$0xff]   ;;  %v243_v4 = vld [vmem:[%s333_s1 + $0x68] sm:$0xff]  }
   0x2   :  { %v240_v1 = vld [vmem:[%s333_s1 + $0x38] sm:$0xff]   ;;  %217 = vmatprep.subr.bf16.mxu0 %v239_v0  ;;  %v242_v3 = vld [vmem:[%s333_s1 + $0x30] sm:$0xff]   ;;  %v244_v5 = vld [vmem:[%s333_s1 + $0x28] sm:$0xff]  }
   0x3   :  { %218 = vmatpush3.bf16.msra.mxu0 %v240_v1  ;;  %v245_v6 = vld [vmem:[%s333_s1 + $0x60] sm:$0xff]   ;;  %v247_v8 = vld [vmem:[%s333_s1 + $0x58] sm:$0xff]   ;;  %v249_v10 = vld [vmem:[%s333_s1 + $0x50] sm:$0xff]  }
   0x4   :  { %219 = vmatprep.subr.bf16.mxu0 %v241_v2  ;;  %v246_v7 = vld [vmem:[%s333_s1 + $0x20] sm:$0xff]   ;;  %v248_v9 = vld [vmem:[%s333_s1 + $0x18] sm:$0xff]   ;;  %v250_v12 = vld [vmem:[%s333_s1 + $0x10] sm:$0xff]  }
   0x5   :  { %v257_v11 = vld [vmem:[%s334_s0 + $0x4] ss:$8 sps:$4 sm:$0xff]   ;;  %v255_v17 = vld [vmem:[%s334_s0] ss:$8 sps:$4 sm:$0xff]  }
   0x6   :  { %184 = vmatprep.mubr.bf16.mxu0 %v257_v11  ;;  %v251_v13 = vld [vmem:[%s333_s1 + $0x48] sm:$0xff]   ;;  %v253_v15 = vld [vmem:[%s333_s1 + $0x40] sm:$0xff]  }
   0x7   :  { %220 = vmatpush3.bf16.msra.mxu0 %v242_v3  ;;  %v252_v14 = vld [vmem:[%s333_s1 + $0x8] sm:$0xff]   ;;  %v254_v16 = vld [vmem:[%s333_s1] sm:$0xff]  }
   0x8   :  { %221 = vmatprep.subr.bf16.mxu0 %v243_v4 }
   0xb   :  { %222 = vmatpush3.bf16.msra.mxu0 %v244_v5 }
   0xc   :  { %223 = vmatprep.subr.bf16.mxu0 %v245_v6 }
   0xf   :  { %224 = vmatpush3.bf16.msra.mxu0 %v246_v7 }
  0x10   :  { %225 = vmatprep.subr.bf16.mxu0 %v247_v8 }
  0x13   :  { %226 = vmatpush3.bf16.msra.mxu0 %v248_v9 }
  0x14   :  { %227 = vmatprep.subr.bf16.mxu0 %v249_v10 }
  0x17   :  { %228 = vmatpush3.bf16.msra.mxu0 %v250_v12 }
  0x18   :  { %229 = vmatprep.subr.bf16.mxu0 %v251_v13 }
  0x1b   :  { %230 = vmatpush3.bf16.msra.mxu0 %v252_v14 }
  0x1c   :  { %231 = vmatprep.subr.bf16.mxu0 %v253_v15 }
  0x1f   :  { %232 = vmatpush3.bf16.msra.mxu0 %v254_v16 }
  0x22   :  { %185 = vmatmul.mubr.bf16.vlgmr.msra.gmra.mxu0 %v255_v17 }
  0xe2   :  { %v233_v18 = vpop.f32.mrf.mxu0 }
  0xe4   :  { %v234_v19 = vpop.f32.mrf.mxu0 }
  0xe5   :  { %v235_v20 = vadd.f32 %v234_v19, %v233_v18 }
  0xe6   :  { %v236_v21 = vpop.f32.mrf.mxu0 }
  0xe7   :  { %193 = vst [vmem:[%s335_s2] sm:$0xff] %v235_v20 }
  0xe8   :  { %v237_v22 = vpop.f32.mrf.mxu0 }
  0xe9   :  { %v238_v23 = vadd.f32 %v237_v22, %v236_v21 }
  0xeb   :  { %194 = vst [vmem:[%s335_s2 + $0x8] sm:$0xff] %v238_v23 }

</bundles_post_ra>
